<compile_context>
chip_gen: v7x
topology: tpu7x:2x2x1
jax: 0.10.0
libtpu: 0.0.40
codegen_flags: <defaults>
</compile_context>

<pallas_src>
import functools

import jax
import jax.numpy as jnp
from jax.experimental import pallas as pl
from jax.experimental.pallas import tpu as pltpu


def _round_up(x, m):
    return (x + m - 1) // m * m


def _mlp_kernel(x_ref, w1_ref, b1_ref, w2_ref, b2_ref, o_ref):
    # Cast f32 input to MXU dtype in-kernel (VPU work hidden under DMA/MXU),
    # avoiding a separate HBM cast pass in the wrapper.
    x = x_ref[...].astype(w1_ref.dtype)
    # fc1: MXU with f32 accumulation, bias + ReLU epilogue in f32.
    h = jnp.dot(x, w1_ref[...], preferred_element_type=jnp.float32)
    h = jnp.maximum(h + b1_ref[...], 0.0)          # b1 is (1, hidden_p) -> broadcast
    # fc2: feed MXU in its operand dtype again, accumulate f32.
    h = h.astype(w2_ref.dtype)
    o = jnp.dot(h, w2_ref[...], preferred_element_type=jnp.float32)
    o = jnp.maximum(o + b2_ref[...], 0.0)          # b2 is (1, kinds)
    o_ref[...] = o.astype(o_ref.dtype)             # (tm, kinds) store, unpadded


def prepare_params(w1, b1, w2, b2, *, mxu_dtype=jnp.bfloat16):
    """Pad the hidden dim to a lane multiple and cast weights once (hoisted out of
    the per-call forward path). w1:(in,hidden) b1:(hidden,) w2:(hidden,kinds) b2:(kinds,)."""
    in_dim, hidden = w1.shape
    kinds = w2.shape[1]
    hidden_p = _round_up(hidden, 128)
    w1_p = jnp.zeros((in_dim, hidden_p), mxu_dtype).at[:, :hidden].set(
        w1.astype(mxu_dtype))
    b1_p = jnp.zeros((1, hidden_p), jnp.float32).at[:, :hidden].set(
        b1.astype(jnp.float32))
    w2_p = jnp.zeros((hidden_p, kinds), mxu_dtype).at[:hidden, :].set(
        w2.astype(mxu_dtype))
    b2_p = b2.astype(jnp.float32).reshape(1, kinds)
    return w1_p, b1_p, w2_p, b2_p


@functools.partial(jax.jit, static_argnames=("block_m", "out_dtype"))
def video_classification_net(feat, w1_p, b1_p, w2_p, b2_p, *, block_m=1024,
                             out_dtype=jnp.float32):
    """feat: (B, input_size) f32; params from prepare_params(). Returns (B, kinds)."""
    B, in_dim = feat.shape
    hidden_p = w1_p.shape[1]
    kinds = w2_p.shape[1]

    # Batch tile: as large as block_m allows (amortize grid-step overhead), but
    # keep >=2 grid steps when the batch permits so v7x's 2 TensorCores both work.
    tm = min(block_m, _round_up(B, 8))
    if B >= 16 and pl.cdiv(B, tm) < 2:
        tm = max(8, _round_up(pl.cdiv(B, 2), 8))
    grid = (pl.cdiv(B, tm),)

    itemsize = lambda a: a.size * a.dtype.itemsize
    cost = pl.CostEstimate(
        flops=2 * B * (in_dim * hidden_p + hidden_p * kinds),
        transcendentals=0,
        bytes_accessed=(itemsize(feat) + itemsize(w1_p) + itemsize(b1_p)
                        + itemsize(w2_p) + itemsize(b2_p)
                        + B * kinds * jnp.dtype(out_dtype).itemsize),
    )

    return pl.pallas_call(
        _mlp_kernel,
        out_shape=jax.ShapeDtypeStruct((B, kinds), out_dtype),
        grid_spec=pltpu.PrefetchScalarGridSpec(
            num_scalar_prefetch=0,
            grid=grid,
            in_specs=[
                # x streams over the batch grid axis (f32, cast in kernel).
                pl.BlockSpec((tm, in_dim), lambda i: (i, 0)),
                # Weights / biases pinned at block (0,0): stay resident in VMEM.
                pl.BlockSpec((in_dim, hidden_p), lambda i: (0, 0)),
                pl.BlockSpec((1, hidden_p), lambda i: (0, 0)),
                pl.BlockSpec((hidden_p, kinds), lambda i: (0, 0)),
                pl.BlockSpec((1, kinds), lambda i: (0, 0)),
            ],
            # Unpadded output block: last dim == full array dim (legal), avoids
            # a padded 8x writeback + an extra slice pass over HBM.
            out_specs=pl.BlockSpec((tm, kinds), lambda i: (i, 0)),
        ),
        compiler_params=pltpu.CompilerParams(
            # Independent batch tiles -> shardable across v7x's 2 TensorCores.
            dimension_semantics=("parallel",),
            # Double-buffered (tm, in_dim) f32 + (tm, kinds) tiles plus tiny
            # resident weights: comfortably under every chip's scoped VMEM.
            vmem_limit_bytes=32 * 1024 * 1024,
        ),
        cost_estimate=cost,
    )(feat, w1_p, b1_p, w2_p, b2_p)


def xavier_normal(key, fan_in, fan_out):
    # matches torch.nn.init.xavier_normal_: std = sqrt(2 / (fan_in + fan_out))
    std = (2.0 / (fan_in + fan_out)) ** 0.5
    return std * jax.random.normal(key, (fan_in, fan_out), dtype=jnp.float32)


if __name__ == "__main__":
    # Small shapes consistent with the module: batch=8, input_size=64,
    # hidden_size=32, kinds=16.
    batch, input_size, hidden_size, kinds = 8, 64, 32, 16

    key = jax.random.PRNGKey(0)
    k_feat, k_w1, k_w2 = jax.random.split(key, 3)

    feat = jax.random.normal(k_feat, (batch, input_size), dtype=jnp.float32)

    # Deterministic parameter init mirroring init_params(): xavier-normal
    # weights, zero biases. Weights are stored transposed vs. nn.Linear.
    w1 = xavier_normal(k_w1, input_size, hidden_size)   # fc1.weight.T
    b1 = jnp.zeros((hidden_size,), dtype=jnp.float32)   # fc1.bias
    w2 = xavier_normal(k_w2, hidden_size, kinds)        # fc2.weight.T
    b2 = jnp.zeros((kinds,), dtype=jnp.float32)         # fc2.bias

    # Pad/cast params once (hoisted out of the forward path).
    params = prepare_params(w1, b1, w2, b2)

    out = video_classification_net(feat, *params)
    jax.block_until_ready(out)

    # Reference in plain JAX with the same bf16 rounding of MXU operands
    # (f32 accumulation), matching the kernel's numerics.
    xf = feat.astype(jnp.bfloat16).astype(jnp.float32)
    w1f = w1.astype(jnp.bfloat16).astype(jnp.float32)
    w2f = w2.astype(jnp.bfloat16).astype(jnp.float32)
    h_ref = jnp.maximum(xf @ w1f + b1, 0.0)
    h_ref = h_ref.astype(jnp.bfloat16).astype(jnp.float32)
    ref = jnp.maximum(h_ref @ w2f + b2, 0.0)

    assert out.shape == (batch, kinds)
    assert out.dtype == jnp.float32
    assert jnp.allclose(out, ref, atol=1e-3, rtol=1e-3)

    print("KERNEL_OK")
</pallas_src>

<mosaic_0001>
module attributes {stable_mosaic.version = 11 : i64} {
  func.func @_mlp_kernel(%arg0: i32, %arg1: memref<8x64xf32, #tpu.memory_space<vmem>>, %arg2: memref<64x128xbf16, #tpu.memory_space<vmem>>, %arg3: memref<1x128xf32, #tpu.memory_space<vmem>>, %arg4: memref<128x16xbf16, #tpu.memory_space<vmem>>, %arg5: memref<1x16xf32, #tpu.memory_space<vmem>>, %arg6: memref<8x16xf32, #tpu.memory_space<vmem>>) attributes {dimension_semantics = [#tpu.dimension_semantics<parallel>], iteration_bounds = array<i64: 1>, scalar_prefetch = 0 : i64, scratch_operands = 0 : i64, tpu.core_type = #tpu.core_type<tc>, window_params = [{transform_indices = @transform_0, window_bounds = array<i64: 8, 64>}, {pipeline_mode = #tpu.pipeline_mode<synchronous>, transform_indices = @transform_1, window_bounds = array<i64: 64, 128>}, {pipeline_mode = #tpu.pipeline_mode<synchronous>, transform_indices = @transform_2, window_bounds = array<i64: 1, 128>}, {pipeline_mode = #tpu.pipeline_mode<synchronous>, transform_indices = @transform_3, window_bounds = array<i64: 128, 16>}, {pipeline_mode = #tpu.pipeline_mode<synchronous>, transform_indices = @transform_4, window_bounds = array<i64: 1, 16>}, {transform_indices = @transform_5, window_bounds = array<i64: 8, 16>}]} {
    %c0 = arith.constant 0 : index
    %c0_0 = arith.constant 0 : index
    %0 = vector.load %arg1[%c0, %c0_0] : memref<8x64xf32, #tpu.memory_space<vmem>>, vector<8x64xf32>
    %1 = arith.truncf %0 : vector<8x64xf32> to vector<8x64xbf16>
    %c0_1 = arith.constant 0 : index
    %c0_2 = arith.constant 0 : index
    %2 = vector.load %arg2[%c0_1, %c0_2] : memref<64x128xbf16, #tpu.memory_space<vmem>>, vector<64x128xbf16>
    %cst = arith.constant dense<0.000000e+00> : vector<8x128xf32>
    %3 = tpu.matmul %1, %2, %cst {dimension_numbers = #tpu.dot_dimension_numbers<[1], [0], [0], [1], [0, 0, 1, 1], [], []>} : vector<8x64xbf16>, vector<64x128xbf16>, vector<8x128xf32> -> vector<8x128xf32>
    %c0_3 = arith.constant 0 : index
    %c0_4 = arith.constant 0 : index
    %4 = vector.load %arg3[%c0_3, %c0_4] : memref<1x128xf32, #tpu.memory_space<vmem>>, vector<1x128xf32>
    %5 = vector.broadcast %4 : vector<1x128xf32> to vector<8x128xf32>
    %6 = arith.addf %3, %5 : vector<8x128xf32>
    %cst_5 = arith.constant 0.000000e+00 : f32
    %7 = vector.broadcast %cst_5 : f32 to vector<8x128xf32>
    %8 = arith.maximumf %6, %7 : vector<8x128xf32>
    %9 = arith.truncf %8 : vector<8x128xf32> to vector<8x128xbf16>
    %c0_6 = arith.constant 0 : index
    %c0_7 = arith.constant 0 : index
    %10 = vector.load %arg4[%c0_6, %c0_7] : memref<128x16xbf16, #tpu.memory_space<vmem>>, vector<128x16xbf16>
    %cst_8 = arith.constant dense<0.000000e+00> : vector<8x16xf32>
    %11 = tpu.matmul %9, %10, %cst_8 {dimension_numbers = #tpu.dot_dimension_numbers<[1], [0], [0], [1], [0, 0, 1, 1], [], []>} : vector<8x128xbf16>, vector<128x16xbf16>, vector<8x16xf32> -> vector<8x16xf32>
    %c0_9 = arith.constant 0 : index
    %c0_10 = arith.constant 0 : index
    %12 = vector.load %arg5[%c0_9, %c0_10] : memref<1x16xf32, #tpu.memory_space<vmem>>, vector<1x16xf32>
    %13 = vector.broadcast %12 : vector<1x16xf32> to vector<8x16xf32>
    %14 = arith.addf %11, %13 : vector<8x16xf32>
    %cst_11 = arith.constant 0.000000e+00 : f32
    %15 = vector.broadcast %cst_11 : f32 to vector<8x16xf32>
    %16 = arith.maximumf %14, %15 : vector<8x16xf32>
    %c0_12 = arith.constant 0 : index
    %c0_13 = arith.constant 0 : index
    %17 = vector.load %arg6[%c0_12, %c0_13] : memref<8x16xf32, #tpu.memory_space<vmem>>, vector<8x16xf32>
    tpu.vector_store %arg6[%c0_12, %c0_13], %16 {strides = array<i32>} : memref<8x16xf32, #tpu.memory_space<vmem>>, vector<8x16xf32>,
    return
  }
  func.func @transform_0(%arg0: i32) -> (i32, i32) {
    %c0_i32 = arith.constant 0 : i32
    %c0_i32_0 = arith.constant 0 : i32
    return %arg0, %c0_i32 : i32, i32
  }
  func.func @transform_1(%arg0: i32) -> (i32, i32) {
    %c0_i32 = arith.constant 0 : i32
    %c0_i32_0 = arith.constant 0 : i32
    %c0_i32_1 = arith.constant 0 : i32
    return %c0_i32, %c0_i32_0 : i32, i32
  }
  func.func @transform_2(%arg0: i32) -> (i32, i32) {
    %c0_i32 = arith.constant 0 : i32
    %c0_i32_0 = arith.constant 0 : i32
    %c0_i32_1 = arith.constant 0 : i32
    return %c0_i32, %c0_i32_0 : i32, i32
  }
  func.func @transform_3(%arg0: i32) -> (i32, i32) {
    %c0_i32 = arith.constant 0 : i32
    %c0_i32_0 = arith.constant 0 : i32
    %c0_i32_1 = arith.constant 0 : i32
    return %c0_i32, %c0_i32_0 : i32, i32
  }
  func.func @transform_4(%arg0: i32) -> (i32, i32) {
    %c0_i32 = arith.constant 0 : i32
    %c0_i32_0 = arith.constant 0 : i32
    %c0_i32_1 = arith.constant 0 : i32
    return %c0_i32, %c0_i32_0 : i32, i32
  }
  func.func @transform_5(%arg0: i32) -> (i32, i32) {
    %c0_i32 = arith.constant 0 : i32
    %c0_i32_0 = arith.constant 0 : i32
    return %arg0, %c0_i32 : i32, i32
  }
}

</mosaic_0001>

<bundles_post_ra>
// kernel: video_classification_net.1
= control target key start
LH: loop header
LB: loop body
LE: loop exit
PB: predicated region body
PF: predicated region fallthrough
CT: control target
= control target key end

     0   :  { %v337_v1 = vmov 0.0   ;;  %vm338_vm0 = vmmov 0   ;;  %s427_s0 = inlined_call_operand.vmem [shape: f32[8,64], index: 0, kind: input, shape index: {}]   ;;  %s428_s1 = inlined_call_operand.vmem [shape: bf16[64,128], index: 1, kind: input, shape index: {}]   ;;  %s429_s2 = inlined_call_operand.vmem [shape: f32[1,128], index: 2, kind: input, shape index: {}]   ;;  %s430_s3 = inlined_call_operand.vmem [shape: bf16[128,16], index: 3, kind: input, shape index: {}]   ;;  %s431_s4 = inlined_call_operand.vmem [shape: f32[1,16], index: 4, kind: input, shape index: {}]   ;;  %s432_s5 = inlined_call_operand.hbm [shape: f32[8,16], index: 5, kind: output, shape index: {}]  }
   0x1   :  { %v301_v0 = vld [vmem:[%s428_s1] sm:$0xff]   ;;  %266 = vmatprep.subr.bf16.mxu0 %v337_v1  ;;  %278 = vmatprep.subr.bf16.mxu1 %v337_v1  ;;  %v302_v2 = vld [vmem:[%s428_s1 + $0x8] sm:$0xff]   ;;  %v303_v4 = vld [vmem:[%s428_s1 + $0x10] sm:$0xff]  }
   0x2   :  { %267 = vmatpush3.bf16.msra.mxu0 %v301_v0  ;;  %274 = vmatprep.mubr.msk.bf16.mxu0 %vm338_vm0, %v337_v1  ;;  %v305_v3 = vld [vmem:[%s430_s3] sm:$0xff]   ;;  %v306_v5 = vld [vmem:[%s430_s3 + $0x8] sm:$0xff]   ;;  %v304_v6 = vld [vmem:[%s428_s1 + $0x18] sm:$0xff]  }
   0x3   :  { %268 = vmatprep.subr.bf16.mxu0 %v337_v1  ;;  %294 = vmatprep.mubr.msk.bf16.mxu1 %vm338_vm0, %v337_v1  ;;  %v22_v7 = vld [vmem:[%s427_s0] sm:$0xff]  ;;  %v307_v8 = vld [vmem:[%s430_s3 + $0x10] sm:$0xff]  }
   0x4   :  { %279 = vmatpush3.bf16.msra.mxu1 %v305_v3 }
   0x5   :  { %280 = vmatprep.subr.bf16.mxu1 %v337_v1 }
   0x6   :  { %269 = vmatpush3.bf16.msra.mxu0 %v302_v2 }
   0x7   :  { %270 = vmatprep.subr.bf16.mxu0 %v337_v1 }
   0x8   :  { %281 = vmatpush3.bf16.msra.mxu1 %v306_v5 }
   0x9   :  { %282 = vmatprep.subr.bf16.mxu1 %v337_v1 }
   0xa   :  { %271 = vmatpush3.bf16.msra.mxu0 %v303_v4 }
   0xb   :  { %272 = vmatprep.subr.bf16.mxu0 %v337_v1 }
   0xc   :  { %10 = vsyncpa [#allocation3], 0  ;;  %v23_v9 = vpack.c.bf16 %v22_v7, %v22_v7  ;;  %vm63_vm1 = vcmask 523264   ;;  %283 = vmatpush3.bf16.msra.mxu1 %v307_v8  ;;  %v308_v10 = vld [vmem:[%s430_s3 + $0x18] sm:$0xff]   ;;  %v309_v11 = vld [vmem:[%s430_s3 + $0x20] sm:$0xff]   ;;  %s339_s21 = smov [#allocation2]  }
   0xd   :  { %284 = vmatprep.subr.bf16.mxu1 %v337_v1  ;;  %v310_v12 = vld [vmem:[%s430_s3 + $0x28] sm:$0xff]   ;;  %v311_v13 = vld [vmem:[%s430_s3 + $0x30] sm:$0xff]   ;;  %v312_v14 = vld [vmem:[%s430_s3 + $0x38] sm:$0xff]   ;;  %s229_s3 = sshll.u32 %s339_s21, 4  ;;  %vm221_vm2 = vcmask 130048   ;;  %s230_s3 = int_to_ptr.vmem [resolvable:$true] %s229_s3 }
   0xe   :  { %273 = vmatpush3.bf16.msra.mxu0 %v304_v6  ;;  %v237_v15 = vld [vmem:[%s429_s2] ss:$0 sm:$0xff]  ;;  %s313_s2 = scalar_lea.vmem %s230_s3, 128  ;;  %p318_p1 = scmp.lt.s32.totalorder %s230_s3, %s230_s3 }
   0xf   :  { %v243_v23 = vld [vmem:[%s431_s4] ss:$0 sm:$0xff]  ;;  %p314_p0 = scmp.ne.s32.totalorder %s230_s3, %s313_s2  ;;  %p319_p2 = scmp.lt.s32.totalorder %s313_s2, %s313_s2 }
  0x10   :  { %285 = vmatpush3.bf16.msra.mxu1 %v308_v10 }
  0x11   :  { %275 = vmatmul.mubr.msk.bf16.vlgmr.msra.gmra.mrb[0].mxu0 %vm63_vm1, %v23_v9  ;;  %286 = vmatprep.subr.bf16.mxu1 %v337_v1  ;;  %p320_p3 = por %p319_p2, %p318_p1 }
  0x13   :  { %p321_p4 = pnand %p320_p3, %p314_p0 }
  0x14   :  { %287 = vmatpush3.bf16.msra.mxu1 %v309_v11 }
  0x15   :  { %288 = vmatprep.subr.bf16.mxu1 %v337_v1 }
  0x18   :  { %289 = vmatpush3.bf16.msra.mxu1 %v310_v12 }
  0x19   :  { %290 = vmatprep.subr.bf16.mxu1 %v337_v1 }
  0x1c   :  { %291 = vmatpush3.bf16.msra.mxu1 %v311_v13 }
  0x1d   :  { %292 = vmatprep.subr.bf16.mxu1 %v337_v1 }
  0x20   :  { %293 = vmatpush3.bf16.msra.mxu1 %v312_v14 }
  0xe4   :  { %v101_v16 = vpop.f32.mrb[0].mxu0 }
  0xe5   :  { %v102_v17 = vadd.f32 %v237_v15, %v101_v16  ;;  %v276_v18 = vpop.f32.mrb[1].mxu0 }
  0xe6   :  { %v104_v19 = vpop.f32.mrb[2].mxu0 }
  0xe7   :  { %v107_v20 = vmax.f32 %v102_v17, 0.0  ;;  %v277_v21 = vpop.f32.mrb[3].mxu0 }
  0xe9   :  { %v108_v22 = vpack.c.bf16 %v107_v20, %v107_v20 }
  0xeb   :  { %295 = vmatmul.mubr.bf16.vlgmr.msra.gmra.mrb[0].mxu1 %v108_v22 }
 0x1be   :  { %v214_v24 = vpop.f32.mrb[0].mxu1 }
 0x1bf   :  { %v215_v25 = vadd.f32 %v243_v23, %v214_v24  ;;  %v296_v26 = vpop.f32.mrb[1].mxu1 }
 0x1c0   :  { %v217_v27 = vpop.f32.mrb[2].mxu1 }
 0x1c1   :  { %v220_v28 = vmax.f32 %v215_v25, 0.0  ;;  %v297_v29 = vpop.f32.mrb[3].mxu1 }
 0x1c3   :  { %222 = vst.msk [vmem:[#allocation2] sm:$0xff] %vm221_vm2, %v220_v28 }
 0x1c4   :  { %324 = shalt.err (!%p321_p4)
}
 0x1c5   :  { %s325_s23 = scalar_lea.hbm %s432_s5, 128 }
 0x1c6   :  { %p326_p5 = scmp.ne.s32.totalorder %s432_s5, %s325_s23  ;;  %p329_p6 = scmp.lt.u32.totalorder %s325_s23, %s432_s5 }
 0x1c8   :  { %p331_p7 = pnand %p329_p6, %p326_p5 }
 0x1ca   :  { %334 = shalt.err (!%p331_p7)
}
 0x1cb   :  { %232 = dma.vmem_to_hbm [thread:$0]  %s230_s3, 128, %s432_s5, [#allocation3]  }
 0x1cc   :  { %335 = dma.done.wait [#allocation3], 128  }
 0x1cd   :  { %336 = vsyncadd [#allocation3], 4294967168 }
 0x1ce   :  { %236 = vsyncpa [#allocation3], 1 }

</bundles_post_ra>
